<compile_context>
chip_gen: v5e
topology: v5e:2x2
jax: 0.10.0
libtpu: 0.0.40
codegen_flags: <defaults>
</compile_context>

<pallas_src>
import functools

import jax
import jax.numpy as jnp
from jax.experimental import pallas as pl
from jax.experimental.pallas import tpu as pltpu

KERNEL_SIZE = 32   # conv1 kernel size
STRIDE = 16        # conv1 stride (KERNEL_SIZE == 2 * STRIDE)
NEG_SLOPE = 0.01   # F.leaky_relu default negative_slope
LANE = 128


def _conv_stem_kernel(x_ref, wa_ref, wb_ref, b_ref, o_ref, *, tile_l, c_out):
    # x_ref : (1, Nc_pad, Kh)      f32  - all 16-wide input chunks of batch b
    # wa_ref: (Kh, N_pad)          bf16 - taps 0..15  of conv1 weight (zero-padded cols)
    # wb_ref: (Kh, N_pad)          bf16 - taps 16..31 of conv1 weight
    # b_ref : (C_out, 1)           f32  - conv1 bias (as a column)
    # o_ref : (1, C_out, tile_l)   f32  - NCL output tile (lane axis = L_out)
    lt = pl.program_id(1)
    base = pl.multiple_of(lt * tile_l, 128)

    # One aligned slab load covering this tile's chunks plus the +1-chunk halo.
    slab = x_ref[0, pl.ds(base, tile_l + 8), :]            # (tile_l+8, Kh) f32
    xa = slab[:tile_l, :].astype(jnp.bfloat16)             # chunk l     -> taps 0..15
    xb = slab[1:tile_l + 1, :].astype(jnp.bfloat16)        # chunk l + 1 -> taps 16..31

    y = jnp.dot(xa, wa_ref[...], preferred_element_type=jnp.float32)
    y = y + jnp.dot(xb, wb_ref[...], preferred_element_type=jnp.float32)

    # (tile_l, N_pad) -> (C_out, tile_l): NCL-direct, lane-dense store.
    yt = jnp.transpose(y)[:c_out, :]
    yt = yt + b_ref[...]
    o_ref[0, :, :] = jnp.where(yt > 0.0, yt, NEG_SLOPE * yt)


@jax.jit
def conv_stem_forward(x, w, b):
    """x: (B, C_in, L) f32; w: (C_out, C_in, 32) f32; b: (C_out,) f32.

    Returns (B, C_out, L_out) f32, matching Conv1d(k=32, s=16, p=0) + leaky_relu.
    """
    B, C_in, L = x.shape
    C_out = w.shape[0]
    Nc = L // STRIDE                 # number of 16-wide chunks actually used
    L_out = Nc - 1                   # == (L - 32) // 16 + 1
    Kh = C_in * STRIDE               # half-window feature width

    # ---- tiling ----
    TILE_L = min(512, LANE * pl.cdiv(L_out, LANE))     # lane-dense output tiles
    num_lt = pl.cdiv(L_out, TILE_L)
    LoutPad = num_lt * TILE_L
    Nc_pad = LoutPad + 8                               # room for the +1 halo (8-aligned)
    N_pad = LANE * pl.cdiv(C_out, LANE)                # pad MXU N to a full lane multiple

    # ---- glue: chunked layout (no gather, no duplication; one transpose) ----
    # x_t[b, j, c*16 + t] = x[b, c, 16*j + t]
    x_c = x[:, :, :Nc * STRIDE].reshape(B, C_in, Nc, STRIDE)
    x_t = jnp.transpose(x_c, (0, 2, 1, 3)).reshape(B, Nc, Kh)
    x_t = jnp.pad(x_t, ((0, 0), (0, Nc_pad - Nc), (0, 0)))
    # TODO(synk): for very long L a second-level chunking of the per-batch chunk
    # block (instead of keeping it whole in VMEM) would be added here.

    # conv1 weight split into its two 16-tap halves, K-major = c*16 + t.
    wa = jnp.pad(w[:, :, :STRIDE].reshape(C_out, Kh).T,
                 ((0, 0), (0, N_pad - C_out))).astype(jnp.bfloat16)
    wb = jnp.pad(w[:, :, STRIDE:].reshape(C_out, Kh).T,
                 ((0, 0), (0, N_pad - C_out))).astype(jnp.bfloat16)
    b_col = b.reshape(C_out, 1).astype(jnp.float32)

    # ---- resource hints ----
    def _rup(a, m):
        return (a + m - 1) // m * m

    x_blk_bytes = Nc_pad * _rup(Kh, LANE) * 4
    out_blk_bytes = _rup(C_out, 8) * TILE_L * 4
    w_bytes = 2 * Kh * N_pad * 2 + C_out * 4
    vmem_limit = int(min(64 * 2**20,
                         2 * x_blk_bytes + 2 * out_blk_bytes + w_bytes + (16 << 20)))

    flops = 2 * B * LoutPad * (2 * Kh) * N_pad
    bytes_accessed = (B * Nc_pad * Kh * 4          # chunked activations (f32)
                      + 2 * Kh * N_pad * 2         # bf16 weights
                      + C_out * 4                  # bias
                      + B * C_out * LoutPad * 4)   # output
    cost = pl.CostEstimate(flops=flops, transcendentals=0,
                           bytes_accessed=bytes_accessed)

    kernel = functools.partial(_conv_stem_kernel, tile_l=TILE_L, c_out=C_out)

    out_pad = pl.pallas_call(
        kernel,
        out_shape=jax.ShapeDtypeStruct((B, C_out, LoutPad), jnp.float32),
        grid=(B, num_lt),
        in_specs=[
            # per-batch chunk block, revisited across L tiles (fetched once per b)
            pl.BlockSpec((1, Nc_pad, Kh), lambda bb, lt: (bb, 0, 0)),
            pl.BlockSpec((Kh, N_pad), lambda bb, lt: (0, 0)),
            pl.BlockSpec((Kh, N_pad), lambda bb, lt: (0, 0)),
            pl.BlockSpec((C_out, 1), lambda bb, lt: (0, 0)),
        ],
        out_specs=pl.BlockSpec((1, C_out, TILE_L), lambda bb, lt: (bb, 0, lt)),
        compiler_params=pltpu.CompilerParams(
            dimension_semantics=("parallel", "parallel"),
            vmem_limit_bytes=vmem_limit),
        cost_estimate=cost,
    )(x_t, wa, wb, b_col)

    return out_pad[:, :, :L_out]


def _reference_forward(x, w, b):
    """Pure-JAX reference (lax conv, full f32) for correctness checking."""
    out = jax.lax.conv_general_dilated(
        x, w, window_strides=(STRIDE,), padding="VALID",
        dimension_numbers=("NCH", "OIH", "NCH"),
        precision=jax.lax.Precision.HIGHEST)
    out = out + b[None, :, None]
    return jnp.where(out > 0, out, NEG_SLOPE * out)


if __name__ == "__main__":
    key = jax.random.PRNGKey(0)
    k_x, k_w, k_b = jax.random.split(key, 3)

    # Small shapes consistent with the module: in_channels=4, out_channels=32
    # (divisible by 8 for the unused GroupNorm), batch=2, length=144 -> L_out=8.
    B, C_in, C_out, L = 2, 4, 32, 144

    fan_in = C_in * KERNEL_SIZE
    bound = 1.0 / (fan_in ** 0.5)
    w1 = jax.random.uniform(k_w, (C_out, C_in, KERNEL_SIZE),
                            minval=-bound, maxval=bound, dtype=jnp.float32)
    b1 = jax.random.uniform(k_b, (C_out,), minval=-bound, maxval=bound,
                            dtype=jnp.float32)
    # TODO(synk): conv2, conv3 and GroupNorm params exist in __init__ but are
    # unused in forward(), so they are not instantiated here.

    x = jax.random.normal(k_x, (B, C_in, L), dtype=jnp.float32)

    out = jax.block_until_ready(conv_stem_forward(x, w1, b1))

    L_out = (L - KERNEL_SIZE) // STRIDE + 1
    assert out.shape == (B, C_out, L_out)

    # The kernel multiplies in bf16 with f32 accumulation: check tightly against
    # an f32 conv on bf16-rounded operands, and loosely against the full-f32
    # conv (PyTorch semantics; difference is only bf16 operand rounding).
    x_q = x.astype(jnp.bfloat16).astype(jnp.float32)
    w_q = w1.astype(jnp.bfloat16).astype(jnp.float32)
    ref_q = jax.block_until_ready(_reference_forward(x_q, w_q, b1))
    ref_f = jax.block_until_ready(_reference_forward(x, w1, b1))
    assert jnp.allclose(out, ref_q, atol=1e-4, rtol=1e-4), \
        float(jnp.max(jnp.abs(out - ref_q)))
    assert jnp.allclose(out, ref_f, atol=5e-2, rtol=5e-2), \
        float(jnp.max(jnp.abs(out - ref_f)))

    print("KERNEL_OK")
</pallas_src>

<mosaic_0001>
module attributes {stable_mosaic.version = 11 : i64} {
  func.func @_conv_stem_kernel(%arg0: i32, %arg1: i32, %arg2: memref<1x136x64xf32, #tpu.memory_space<vmem>>, %arg3: memref<64x128xbf16, #tpu.memory_space<vmem>>, %arg4: memref<64x128xbf16, #tpu.memory_space<vmem>>, %arg5: memref<32x1xf32, #tpu.memory_space<vmem>>, %arg6: memref<1x32x128xf32, #tpu.memory_space<vmem>>) attributes {dimension_semantics = [#tpu.dimension_semantics<parallel>, #tpu.dimension_semantics<parallel>], iteration_bounds = array<i64: 2, 1>, scalar_prefetch = 0 : i64, scratch_operands = 0 : i64, tpu.core_type = #tpu.core_type<tc>, window_params = [{transform_indices = @transform_0, window_bounds = array<i64: 1, 136, 64>}, {pipeline_mode = #tpu.pipeline_mode<synchronous>, transform_indices = @transform_1, window_bounds = array<i64: 64, 128>}, {pipeline_mode = #tpu.pipeline_mode<synchronous>, transform_indices = @transform_2, window_bounds = array<i64: 64, 128>}, {pipeline_mode = #tpu.pipeline_mode<synchronous>, transform_indices = @transform_3, window_bounds = array<i64: 32, 1>}, {transform_indices = @transform_4, window_bounds = array<i64: 1, 32, 128>}]} {
    %c128_i32 = arith.constant 128 : i32
    %0 = arith.muli %arg1, %c128_i32 : i32
    %1 = tpu.assume_multiple %0, 128 : i32
    %c0 = arith.constant 0 : index
    %2 = arith.index_cast %1 : i32 to index
    %c0_0 = arith.constant 0 : index
    %3 = vector.load %arg2[%c0, %2, %c0_0] : memref<1x136x64xf32, #tpu.memory_space<vmem>>, vector<1x136x64xf32>
    %4 = vector.shape_cast %3 : vector<1x136x64xf32> to vector<136x64xf32>
    %5 = vector.extract_strided_slice %4 {offsets = [0, 0], sizes = [128, 64], strides = [1, 1]} : vector<136x64xf32> to vector<128x64xf32>
    %6 = arith.truncf %5 : vector<128x64xf32> to vector<128x64xbf16>
    %7 = vector.extract_strided_slice %4 {offsets = [1, 0], sizes = [128, 64], strides = [1, 1]} : vector<136x64xf32> to vector<128x64xf32>
    %8 = arith.truncf %7 : vector<128x64xf32> to vector<128x64xbf16>
    %c0_1 = arith.constant 0 : index
    %c0_2 = arith.constant 0 : index
    %9 = vector.load %arg3[%c0_1, %c0_2] : memref<64x128xbf16, #tpu.memory_space<vmem>>, vector<64x128xbf16>
    %cst = arith.constant dense<0.000000e+00> : vector<128x128xf32>
    %10 = tpu.matmul %6, %9, %cst {dimension_numbers = #tpu.dot_dimension_numbers<[1], [0], [0], [1], [0, 0, 1, 1], [], []>} : vector<128x64xbf16>, vector<64x128xbf16>, vector<128x128xf32> -> vector<128x128xf32>
    %c0_3 = arith.constant 0 : index
    %c0_4 = arith.constant 0 : index
    %11 = vector.load %arg4[%c0_3, %c0_4] : memref<64x128xbf16, #tpu.memory_space<vmem>>, vector<64x128xbf16>
    %cst_5 = arith.constant dense<0.000000e+00> : vector<128x128xf32>
    %12 = tpu.matmul %8, %11, %cst_5 {dimension_numbers = #tpu.dot_dimension_numbers<[1], [0], [0], [1], [0, 0, 1, 1], [], []>} : vector<128x64xbf16>, vector<64x128xbf16>, vector<128x128xf32> -> vector<128x128xf32>
    %13 = arith.addf %10, %12 : vector<128x128xf32>
    %14 = tpu.transpose %13, [1, 0] : vector<128x128xf32> -> vector<128x128xf32>
    %15 = vector.extract_strided_slice %14 {offsets = [0, 0], sizes = [32, 128], strides = [1, 1]} : vector<128x128xf32> to vector<32x128xf32>
    %c0_6 = arith.constant 0 : index
    %c0_7 = arith.constant 0 : index
    %16 = vector.load %arg5[%c0_6, %c0_7] : memref<32x1xf32, #tpu.memory_space<vmem>>, vector<32x1xf32>
    %17 = vector.broadcast %16 : vector<32x1xf32> to vector<32x128xf32>
    %18 = arith.addf %15, %17 : vector<32x128xf32>
    %cst_8 = arith.constant 0.000000e+00 : f32
    %19 = vector.broadcast %cst_8 : f32 to vector<32x128xf32>
    %20 = arith.cmpf ogt, %18, %19 : vector<32x128xf32>
    %cst_9 = arith.constant 0.00999999977 : f32
    %21 = vector.broadcast %cst_9 : f32 to vector<32x128xf32>
    %22 = arith.mulf %21, %18 : vector<32x128xf32>
    %23 = arith.select %20, %18, %22 : vector<32x128xi1>, vector<32x128xf32>
    %c0_10 = arith.constant 0 : index
    %c0_11 = arith.constant 0 : index
    %c0_12 = arith.constant 0 : index
    %24 = vector.load %arg6[%c0_10, %c0_11, %c0_12] : memref<1x32x128xf32, #tpu.memory_space<vmem>>, vector<1x32x128xf32>
    %25 = vector.shape_cast %24 : vector<1x32x128xf32> to vector<32x128xf32>
    %26 = vector.shape_cast %23 : vector<32x128xf32> to vector<1x32x128xf32>
    tpu.vector_store %arg6[%c0_10, %c0_11, %c0_12], %26 {strides = array<i32>} : memref<1x32x128xf32, #tpu.memory_space<vmem>>, vector<1x32x128xf32>,
    return
  }
  func.func @transform_0(%arg0: i32, %arg1: i32) -> (i32, i32, i32) {
    %c0_i32 = arith.constant 0 : i32
    %c0_i32_0 = arith.constant 0 : i32
    %c0_i32_1 = arith.constant 0 : i32
    return %arg0, %c0_i32, %c0_i32_0 : i32, i32, i32
  }
  func.func @transform_1(%arg0: i32, %arg1: i32) -> (i32, i32) {
    %c0_i32 = arith.constant 0 : i32
    %c0_i32_0 = arith.constant 0 : i32
    %c0_i32_1 = arith.constant 0 : i32
    return %c0_i32, %c0_i32_0 : i32, i32
  }
  func.func @transform_2(%arg0: i32, %arg1: i32) -> (i32, i32) {
    %c0_i32 = arith.constant 0 : i32
    %c0_i32_0 = arith.constant 0 : i32
    %c0_i32_1 = arith.constant 0 : i32
    return %c0_i32, %c0_i32_0 : i32, i32
  }
  func.func @transform_3(%arg0: i32, %arg1: i32) -> (i32, i32) {
    %c0_i32 = arith.constant 0 : i32
    %c0_i32_0 = arith.constant 0 : i32
    %c0_i32_1 = arith.constant 0 : i32
    return %c0_i32, %c0_i32_0 : i32, i32
  }
  func.func @transform_4(%arg0: i32, %arg1: i32) -> (i32, i32, i32) {
    %c0_i32 = arith.constant 0 : i32
    %c0_i32_0 = arith.constant 0 : i32
    return %arg0, %c0_i32, %arg1 : i32, i32, i32
  }
}

</mosaic_0001>

<bundles_post_ra>
// kernel: conv_stem_forward.1
= control target key start
LH: loop header
LB: loop body
LE: loop exit
PB: predicated region body
PF: predicated region fallthrough
CT: control target
= control target key end

     0   :  { %s828_s15 = smov 0   ;;  %s830_s16 = smov 0   ;;  %s947_s0 = inlined_call_operand.vmem [shape: f32[2,136,64], index: 0, kind: input, shape index: {}]   ;;  %s948_s1 = inlined_call_operand.vmem [shape: bf16[64,128], index: 1, kind: input, shape index: {}]   ;;  %s949_s2 = inlined_call_operand.vmem [shape: bf16[64,128], index: 2, kind: input, shape index: {}]   ;;  %s950_s3 = inlined_call_operand.vmem [shape: f32[32,1], index: 3, kind: input, shape index: {}]   ;;  %s951_s4 = inlined_call_operand.vmem [shape: f32[2,32,128], index: 4, kind: output, shape index: {}]  }
   0x1   :  { %s832_s17 = smov 0  }
   0x2 LB: > { %s26_s18 = sadd.s32 1, %s796_s16  ;;  %p678_p0 = scmp.ge.s32.totalorder %s800_s17, 1  ;;  %s800_s17 = sphi %s832_s17, %s14_s17   ;;  %s796_s16 = sphi %s830_s16, %s953_s16   ;;  %s792_s15 = sphi %s828_s15, %s952_s15  }
   0x3   : > { %p28_p1 = scmp.ge.s32.totalorder %s26_s18, 2  ;;  %p176_p2 = scmp.lt.s32.totalorder %s800_s17, 3 }
   0x5   : > { %s955_s18 = smov (%p28_p1, %s26_s18), 0  ;;  %p177_p3 = pnand %p678_p0, %p176_p2 }
   0x6   : > { %p205_p4 = scmp.lt.s32.totalorder (!%p177_p3), %s792_s15, 1 }
   0x7   : > { %180 = sbr.rel (%p177_p3) target bundleno = 381 (0x17d), region = 36 }
   0xc   : > { %v740_v0 = vld [vmem:[%s949_s2 + $0x18] sm:$0xff]  ;;  %v739_v2 = vld [vmem:[%s949_s2 + $0x10] sm:$0xff]  ;;  %s957_s15 = smov (!%p205_p4, %s792_s15), 1  ;;  %v738_v4 = vld [vmem:[%s949_s2 + $0x8] sm:$0xff]  ;;  %vm263_vm0 = vsmask.f32 7424 }
   0xd   : > { %v736_v1 = vld [vmem:[%s948_s1 + $0x18] sm:$0xff]  ;;  %385 = vmatpush.bf16.msra.mxu0 %v740_v0  ;;  %v735_v3 = vld [vmem:[%s948_s1 + $0x10] sm:$0xff]  ;;  %741 = vmatpush.bf16.msra.mxu2 %v740_v0  ;;  %s749_s27 = smul.u32 136, %s957_s15  ;;  %v734_v5 = vld [vmem:[%s948_s1 + $0x8] sm:$0xff]  ;;  %vm356_vm1 = vcmask 523264   ;;  %s732_s25 = sshll.u32 %s957_s15, 5 }
   0xe   : > { %474 = vmatpush.bf16.msra.mxu1 %v736_v1  ;;  %745 = vmatpush.bf16.msra.mxu3 %v736_v1  ;;  %v737_v12 = vld [vmem:[%s949_s2] sm:$0xff]  ;;  %s217_s28 = scalar_lea.vmem %s951_s4, %s732_s25 }
   0xf   : > { %s870_s8 = scalar_lea.vmem %s947_s0, %s749_s27  ;;  %v733_v13 = vld [vmem:[%s948_s1] sm:$0xff] }
  0x10   : > { %v221_v6 = vld [vmem:[%s870_s8] sm:$0xff]  ;;  %v222_v7 = vld [vmem:[%s870_s8 + $0x8] sm:$0xff]  ;;  %v223_v8 = vld [vmem:[%s870_s8 + $0x10] sm:$0xff] }
  0x11   : > { %386 = vmatpush.bf16.msra.mxu0 %v739_v2  ;;  %742 = vmatpush.bf16.msra.mxu2 %v739_v2  ;;  %v224_v9 = vld [vmem:[%s870_s8 + $0x18] sm:$0xff]  ;;  %v238_v10 = vpack.c.bf16 %v222_v7, %v221_v6  ;;  %v225_v20 = vld [vmem:[%s870_s8 + $0x20] sm:$0xff]  ;;  %v226_v21 = vld [vmem:[%s870_s8 + $0x28] sm:$0xff] }
  0x12   : > { %475 = vmatpush.bf16.msra.mxu1 %v735_v3  ;;  %746 = vmatpush.bf16.msra.mxu3 %v735_v3  ;;  %v239_v11 = vpack.c.bf16 %v224_v9, %v223_v8  ;;  %v229_v23 = vld [vmem:[%s870_s8 + $0x40] sm:$0xff]  ;;  %v230_v24 = vld [vmem:[%s870_s8 + $0x48] sm:$0xff]  ;;  %v240_v25 = vpack.c.bf16 %v226_v21, %v225_v20  ;;  %v231_v32 = vld [vmem:[%s870_s8 + $0x50] sm:$0xff] }
  0x13   : > { %v265_v14 = vshrl.u32 %v238_v10, 16  ;;  %v267_v15 = vshll.u32 %v238_v10, 16  ;;  %v242_v26 = vpack.c.bf16 %v230_v24, %v229_v23  ;;  %v232_v33 = vld [vmem:[%s870_s8 + $0x58] sm:$0xff]  ;;  %v227_v39 = vld [vmem:[%s870_s8 + $0x30] sm:$0xff]  ;;  %v233_v43 = vld [vmem:[%s870_s8 + $0x60] sm:$0xff] }
  0x14   : > { %v272_v16 = vshll.u32 %v239_v11, 16  ;;  %v276_v27 = vshrl.u32 %v239_v11, 16  ;;  %v280_v28 = vshll.u32 %v240_v25, 16  ;;  %v243_v35 = vpack.c.bf16 %v232_v33, %v231_v32  ;;  %v228_v40 = vld [vmem:[%s870_s8 + $0x38] sm:$0xff]  ;;  %v234_v44 = vld [vmem:[%s870_s8 + $0x68] sm:$0xff]  ;;  %v235_v45 = vld [vmem:[%s870_s8 + $0x70] sm:$0xff] }
  0x15   : > { %387 = vmatpush.bf16.msra.mxu0 %v738_v4  ;;  %743 = vmatpush.bf16.msra.mxu2 %v738_v4  ;;  %v269_v17 = vrot.slane %v267_v15, 1  ;;  %v296_v29 = vshll.u32 %v242_v26, 16  ;;  %v300_v37 = vshrl.u32 %v242_v26, 16  ;;  %v241_v46 = vpack.c.bf16 %v228_v40, %v227_v39  ;;  %v236_v48 = vld [vmem:[%s870_s8 + $0x78] sm:$0xff]  ;;  %v237_v50 = vld [vmem:[%s870_s8 + $0x80] sm:$0xff] }
  0x16   : > { %476 = vmatpush.bf16.msra.mxu1 %v734_v5  ;;  %747 = vmatpush.bf16.msra.mxu3 %v734_v5  ;;  %v274_v18 = vrot.slane %v272_v16, 1  ;;  %v282_v31 = vrot.slane %v280_v28, 1  ;;  %v304_v38 = vshll.u32 %v243_v35, 16  ;;  %v245_v49 = vpack.c.bf16 %v236_v48, %v235_v45 }
  0x17   : > { %v270_v19 = vor.u32 %v269_v17, %v265_v14  ;;  %v298_v34 = vrot.slane %v296_v29, 1  ;;  %v244_v51 = vpack.c.bf16 %v234_v44, %v233_v43  ;;  %v246_v52 = vpack.c.bf16 %v237_v50, %v237_v50 }
  0x18   : > { %v278_v30 = vor.u32 %v276_v27, %v274_v18  ;;  %v306_v42 = vrot.slane %v304_v38, 1  ;;  %v320_v53 = vshll.u32 %v245_v49, 16  ;;  %v324_v54 = vshrl.u32 %v245_v49, 16 }
  0x19   : > { %388 = vmatpush.bf16.msra.mxu0 %v737_v12  ;;  %744 = vmatpush.bf16.msra.mxu2 %v737_v12  ;;  %v275_v22 = vsel %vm263_vm0, %v270_v19, %v274_v18  ;;  %v302_v41 = vor.u32 %v300_v37, %v298_v34  ;;  %v284_v55 = vshrl.u32 %v240_v25, 16  ;;  %v288_v56 = vshll.u32 %v241_v46, 16  ;;  %v552_v37 = vld [vmem:[%s950_s3 + $0x8] sm:$0xff] }
  0x1a   : > { %477 = vmatpush.bf16.msra.mxu1 %v733_v13  ;;  %748 = vmatpush.bf16.msra.mxu3 %v733_v13  ;;  %v283_v36 = vsel %vm263_vm0, %v278_v30, %v282_v31  ;;  %v328_v57 = vshll.u32 %v246_v52, 16  ;;  %v322_v58 = vrot.slane %v320_v53, 1  ;;  %v308_v59 = vshrl.u32 %v243_v35, 16  ;;  %v551_v30 = vld [vmem:[%s950_s3] sm:$0xff] }
  0x1b   : > { %v307_v47 = vsel %vm263_vm0, %v302_v41, %v306_v42  ;;  %v312_v60 = vshll.u32 %v244_v51, 16  ;;  %v286_v63 = vor.u32 %v284_v55, %v282_v31  ;;  %v290_v0 = vrot.slane %v288_v56, 1 }
  0x1c   : > { %698 = vmatmul.msk.bf16.vlgmr.msra.gmra.mxu0 %vm356_vm1, %v275_v22  ;;  %702 = vmatmul.msk.bf16.vlgmr.msra.gmra.mxu2 %vm356_vm1, %v307_v47  ;;  %v330_v61 = vrot.slane %v328_v57, 1  ;;  %v326_v62 = vor.u32 %v324_v54, %v322_v58  ;;  %v310_v2 = vor.u32 %v308_v59, %v306_v42  ;;  %v292_v6 = vshrl.u32 %v241_v46, 16  ;;  %v553_v47 = vld [vmem:[%s950_s3 + $0x10] sm:$0xff] }
  0x1d   : > { %722 = vmatmul.msk.bf16.vlgmr.msra.gmra.mxu1 %vm356_vm1, %v238_v10  ;;  %726 = vmatmul.msk.bf16.vlgmr.msra.gmra.mxu3 %vm356_vm1, %v242_v26  ;;  %v314_v3 = vrot.slane %v312_v60, 1  ;;  %v291_v4 = vsel %vm263_vm0, %v286_v63, %v290_v0  ;;  %v316_v7 = vshrl.u32 %v244_v51, 16  ;;  %v802_v31 = vmov 0  }
  0x1e   : > { %v331_v1 = vsel %vm263_vm0, %v326_v62, %v330_v61  ;;  %v294_v8 = vor.u32 %v292_v6, %v290_v0  ;;  %775 = vset.pattern.permute.xlu1 %v802_v31  ;;  %776 = vset.pattern.permute.xlu2 %v802_v31 }
  0x1f   : > { %v315_v5 = vsel %vm263_vm0, %v310_v2, %v314_v3  ;;  %v318_v9 = vor.u32 %v316_v7, %v314_v3  ;;  %557 = vperm.xlu1 %775, %v551_v30   ;;  %567 = vperm.xlu2 %776, %v553_v47  }
  0x20   : > { %v299_v10 = vsel %vm263_vm0, %v294_v8, %v298_v34 }
  0x27   : > { %562 = vperm.xlu1 %775, %v552_v37  }
  0x2c   : > { %699 = vmatmul.msk.bf16.gmra.mxu0 %vm356_vm1, %v283_v36  ;;  %703 = vmatmul.msk.bf16.gmra.mxu2 %vm356_vm1, %v315_v5 }
  0x2d   : > { %723 = vmatmul.msk.bf16.gmra.mxu1 %vm356_vm1, %v239_v11  ;;  %727 = vmatmul.msk.bf16.gmra.mxu3 %vm356_vm1, %v243_v35  ;;  %v323_v11 = vsel %vm263_vm0, %v318_v9, %v322_v58 }
  0x3c   : > { %700 = vmatmul.msk.bf16.gmra.mxu0 %vm356_vm1, %v291_v4  ;;  %704 = vmatmul.msk.bf16.gmra.mxu2 %vm356_vm1, %v323_v11 }
  0x3d   : > { %724 = vmatmul.msk.bf16.gmra.mxu1 %vm356_vm1, %v240_v25  ;;  %728 = vmatmul.msk.bf16.gmra.mxu3 %vm356_vm1, %v244_v51  ;;  %v554_v51 = vld [vmem:[%s950_s3 + $0x18] sm:$0xff] }
  0x3e   : > { %572 = vperm.xlu2 %776, %v554_v51  }
  0x4c   : > { %701 = vmatmul.msk.bf16.gmra.mxu0 %vm356_vm1, %v299_v10  ;;  %705 = vmatmul.msk.bf16.gmra.mxu2 %vm356_vm1, %v331_v1 }
  0x4d   : > { %725 = vmatmul.msk.bf16.gmra.mxu1 %vm356_vm1, %v241_v46  ;;  %729 = vmatmul.msk.bf16.gmra.mxu3 %vm356_vm1, %v245_v49 }
  0x79   : > { %v568_v10 = vpop.permute.xlu2 %567 }
  0x91   : > { %v558_v1 = vpop.permute.xlu1 %557 }
  0x99   : > { %v390_v12 = vpop.f32.mrf.mxu0  ;;  %v563_v6 = vpop.permute.xlu1 %562 }
  0x9a   : > { %v479_v13 = vpop.f32.mrf.mxu1 }
  0x9b   : > { %v480_v14 = vadd.f32 %v479_v13, %v390_v12 }
  0x9d   : > { %519 = vxpose.xlu0.b32.start [1/16] (narrow) %v480_v14, 32 }
  0x9f   : > { %v410_v32 = vpop.f32.mrf.mxu2 }
  0xa0   : > { %v499_v33 = vpop.f32.mrf.mxu3 }
  0xa1   : > { %v392_v15 = vpop.f32.mrf.mxu0  ;;  %v500_v43 = vadd.f32 %v499_v33, %v410_v32 }
  0xa2   : > { %v481_v16 = vpop.f32.mrf.mxu1 }
  0xa3   : > { %v482_v17 = vadd.f32 %v481_v16, %v392_v15  ;;  %v573_v16 = vpop.permute.xlu2 %572 }
  0xa5   : > { %520 = vxpose.xlu0.b32.cont [2/16] (narrow) %v482_v17, 32 }
  0xa7   : > { %v412_v41 = vpop.f32.mrf.mxu2 }
  0xa8   : > { %v501_v42 = vpop.f32.mrf.mxu3 }
  0xa9   : > { %v395_v18 = vpop.f32.mrf.mxu0  ;;  %v502_v46 = vadd.f32 %v501_v42, %v412_v41 }
  0xaa   : > { %v484_v19 = vpop.f32.mrf.mxu1 }
  0xab   : > { %v485_v20 = vadd.f32 %v484_v19, %v395_v18 }
  0xad   : > { %521 = vxpose.xlu0.b32.cont [3/16] (narrow) %v485_v20, 32 }
  0xaf   : > { %v415_v44 = vpop.f32.mrf.mxu2 }
  0xb0   : > { %v504_v45 = vpop.f32.mrf.mxu3 }
  0xb1   : > { %v397_v21 = vpop.f32.mrf.mxu0  ;;  %v505_v50 = vadd.f32 %v504_v45, %v415_v44 }
  0xb2   : > { %v486_v22 = vpop.f32.mrf.mxu1 }
  0xb3   : > { %v487_v23 = vadd.f32 %v486_v22, %v397_v21 }
  0xb5   : > { %522 = vxpose.xlu0.b32.cont [4/16] (narrow) %v487_v23, 32 }
  0xb7   : > { %v417_v48 = vpop.f32.mrf.mxu2 }
  0xb8   : > { %v506_v49 = vpop.f32.mrf.mxu3 }
  0xb9   : > { %v400_v24 = vpop.f32.mrf.mxu0  ;;  %v507_v54 = vadd.f32 %v506_v49, %v417_v48 }
  0xba   : > { %v489_v25 = vpop.f32.mrf.mxu1 }
  0xbb   : > { %v490_v26 = vadd.f32 %v489_v25, %v400_v24 }
  0xbd   : > { %523 = vxpose.xlu0.b32.cont [5/16] (narrow) %v490_v26, 32 }
  0xbf   : > { %v420_v52 = vpop.f32.mrf.mxu2 }
  0xc0   : > { %v509_v53 = vpop.f32.mrf.mxu3 }
  0xc1   : > { %v402_v27 = vpop.f32.mrf.mxu0  ;;  %v510_v55 = vadd.f32 %v509_v53, %v420_v52 }
  0xc2   : > { %v491_v28 = vpop.f32.mrf.mxu1 }
  0xc3   : > { %v492_v29 = vadd.f32 %v491_v28, %v402_v27 }
  0xc5   : > { %524 = vxpose.xlu0.b32.cont [6/16] (narrow) %v492_v29, 32 }
  0xc7   : > { %v422_v56 = vpop.f32.mrf.mxu2 }
  0xc8   : > { %v511_v57 = vpop.f32.mrf.mxu3 }
  0xc9   : > { %v405_v34 = vpop.f32.mrf.mxu0  ;;  %v512_v58 = vadd.f32 %v511_v57, %v422_v56 }
  0xca   : > { %v494_v35 = vpop.f32.mrf.mxu1 }
  0xcb   : > { %v495_v36 = vadd.f32 %v494_v35, %v405_v34 }
  0xcd   : > { %525 = vxpose.xlu0.b32.cont [7/16] (narrow) %v495_v36, 32 }
  0xcf   : > { %v425_v59 = vpop.f32.mrf.mxu2 }
  0xd0   : > { %v514_v60 = vpop.f32.mrf.mxu3 }
  0xd1   : > { %v407_v38 = vpop.f32.mrf.mxu0  ;;  %v515_v61 = vadd.f32 %v514_v60, %v425_v59 }
  0xd2   : > { %v496_v39 = vpop.f32.mrf.mxu1 }
  0xd3   : > { %v497_v40 = vadd.f32 %v496_v39, %v407_v38 }
  0xd5   : > { %526 = vxpose.xlu0.b32.cont [8/16] (narrow) %v497_v40, 32 }
  0xd7   : > { %v427_v62 = vpop.f32.mrf.mxu2 }
  0xd8   : > { %v516_v63 = vpop.f32.mrf.mxu3 }
  0xd9   : > { %v517_v0 = vadd.f32 %v516_v63, %v427_v62 }
  0xdd   : > { %527 = vxpose.xlu0.b32.cont [9/16] (narrow) %v500_v43, 32 }
  0xe5   : > { %528 = vxpose.xlu0.b32.cont [10/16] (narrow) %v502_v46, 32 }
  0xed   : > { %529 = vxpose.xlu0.b32.cont [11/16] (narrow) %v505_v50, 32 }
  0xf5   : > { %530 = vxpose.xlu0.b32.cont [12/16] (narrow) %v507_v54, 32 }
  0xfd   : > { %531 = vxpose.xlu0.b32.cont [13/16] (narrow) %v510_v55, 32 }
 0x105   : > { %532 = vxpose.xlu0.b32.cont [14/16] (narrow) %v512_v58, 32 }
 0x10d   : > { %533 = vxpose.xlu0.b32.cont [15/16] (narrow) %v515_v61, 32 }
 0x115   : > { %534 = vxpose.xlu0.b32.end [16/16] (narrow) %v517_v0, 32 }
 0x141   : > { %v535_v2 = vpop.trf.xlu0 }
 0x142   : > { %v575_v3 = vadd.f32 %v558_v1, %v535_v2 }
 0x144   : > { %vm579_vm2 = vcmp.gt.f32.partialorder %v575_v3, 0.0  ;;  %v583_v4 = vmul.f32 0.01, %v575_v3 }
 0x146   : > { %v587_v5 = vsel %vm579_vm2, %v575_v3, %v583_v4 }
 0x147   : > { %591 = vst [vmem:[%s217_s28] sm:$0xff] %v587_v5 }
 0x149   : > { %v536_v7 = vpop.trf.xlu0 }
 0x14a   : > { %v576_v8 = vadd.f32 %v563_v6, %v536_v7 }
 0x14c   : > { %vm580_vm3 = vcmp.gt.f32.partialorder %v576_v8, 0.0  ;;  %v584_v9 = vmul.f32 0.01, %v576_v8 }
 0x14e   : > { %v588_v11 = vsel %vm580_vm3, %v576_v8, %v584_v9 }
 0x14f   : > { %592 = vst [vmem:[%s217_s28 + $0x8] sm:$0xff] %v588_v11 }
 0x151   : > { %v537_v12 = vpop.trf.xlu0 }
 0x152   : > { %v577_v13 = vadd.f32 %v568_v10, %v537_v12 }
 0x154   : > { %vm581_vm4 = vcmp.gt.f32.partialorder %v577_v13, 0.0  ;;  %v585_v14 = vmul.f32 0.01, %v577_v13 }
 0x156   : > { %v589_v15 = vsel %vm581_vm4, %v577_v13, %v585_v14 }
 0x157   : > { %593 = vst [vmem:[%s217_s28 + $0x10] sm:$0xff] %v589_v15 }
 0x159   : > { %v538_v17 = vpop.trf.xlu0 }
 0x15a   : > { %v578_v18 = vadd.f32 %v573_v16, %v538_v17 }
 0x15c   : > { %vm582_vm5 = vcmp.gt.f32.partialorder %v578_v18, 0.0  ;;  %v586_v19 = vmul.f32 0.01, %v578_v18 }
 0x15e   : > { %v590_v20 = vsel %vm582_vm5, %v578_v18, %v586_v19 }
 0x15f   : > { %594 = vst [vmem:[%s217_s28 + $0x18] sm:$0xff] %v590_v20 }
 0x17c   : > { %777 = vset.pattern.permute.xlu0 %v802_v31 }
 0x17d PF: > { %s14_s17 = sadd.s32 1, %s800_s17   ;;  %s952_s15 = smov %s796_s16 }
 0x17e   : > { %p11_p5 = scmp.ge.s32.totalorder %s14_s17, 4   ;;  %s953_s16 = smov %s955_s18 }
 0x180   :  { %13 = sbr.rel (!%p11_p5) target bundleno = 2 (0x2), region = 67 }

</bundles_post_ra>
